<compile_context>
chip_gen: v7x
topology: tpu7x:2x2x1
jax: 0.10.0
libtpu: 0.0.40
codegen_flags: <defaults>
</compile_context>

<pallas_src>
import jax
import jax.numpy as jnp
from jax.experimental import pallas as pl
from jax.experimental.pallas import tpu as pltpu

B = 8          # batch per branch
D_IN = 32      # raw input features per branch
E = 50         # embedding dim (concat -> 100, matches fc1 in_features)
H = 25         # fc1 out / bn1 features
O = 2          # fc2 out
LANE = 128     # TPU lane width
BN_EPS = 1e-5

# row offsets inside the stacked weight slab
_W_EMB_LO, _W_EMB_HI = 0, D_IN                    # (32, 256): embedding W in [:, :128]
_W_FC1_LO, _W_FC1_HI = D_IN, D_IN + LANE          # (128, 256): [W1a | W1b]
_W_FC2_LO, _W_FC2_HI = D_IN + LANE, D_IN + 2 * LANE  # (128, 256): fc2 W in [:, :128]


def siamese_kernel(x1_ref, x2_ref, w_ref, vec_ref, out_ref):
    bsz = out_ref.shape[0]

    # one load of the packed small-vector block (be / b1 / gamma / beta / b2)
    vec = vec_ref[...]                                   # (8, 128) f32
    be, b1, gamma, beta, b2 = vec[0:1], vec[1:2], vec[2:3], vec[3:4], vec[4:5]

    # tile-aligned views into the single stacked weight slab (no copies)
    we = w_ref[_W_EMB_LO:_W_EMB_HI, 0:LANE]              # (32, 128) bf16
    wcat = w_ref[_W_FC1_LO:_W_FC1_HI, :]                 # (128, 256) bf16
    w2 = w_ref[_W_FC2_LO:_W_FC2_HI, 0:LANE]              # (128, 128) bf16

    # stack both branches in-kernel -> ONE shared-embedding MXU push
    x = jnp.concatenate([x1_ref[...], x2_ref[...]], axis=0).astype(jnp.bfloat16)
    es = jnp.dot(x, we, preferred_element_type=jnp.float32) + be    # (2B, 128)

    # fused fc1: cat(e1,e2) @ W1 == es @ [W1a | W1b], one (16,128)x(128,256) push
    res = jnp.dot(es.astype(jnp.bfloat16), wcat,
                  preferred_element_type=jnp.float32)                # (2B, 256)
    h = res[:bsz, 0:LANE] + res[bsz:, LANE:2 * LANE] + b1            # (B, 128)
    h = jnp.maximum(h, 0.0)

    # BatchNorm1d (training-mode batch statistics), single-pass mean/var.
    # Padded lanes (>= H) are all-zero columns -> s1=s2=0, gamma_pad=0, so
    # scale=0, shift=0 and they stay zero (no NaNs thanks to +eps).
    inv_b = 1.0 / bsz
    s1 = jnp.sum(h, axis=0, keepdims=True)
    s2 = jnp.sum(h * h, axis=0, keepdims=True)
    mean = s1 * inv_b
    var = jnp.maximum(s2 * inv_b - mean * mean, 0.0)
    scale = gamma * jax.lax.rsqrt(var + BN_EPS)          # EUP rsqrt
    shift = beta - mean * scale
    hn = h * scale + shift

    # fc2 into a lane-dense (B, 128) slab; true logits live in lanes [:O]
    out_ref[...] = (jnp.dot(hn.astype(jnp.bfloat16), w2,
                            preferred_element_type=jnp.float32) + b2)


def prepare_params(params):
    """One-time prep: pad/cast/pack parameters (hoisted out of the hot path)."""
    we, be, w1, b1, gamma, beta, w2, b2 = params

    # single stacked bf16 weight slab, (288, 256)
    w_all = jnp.zeros((D_IN + 2 * LANE, 2 * LANE), jnp.bfloat16)
    w_all = w_all.at[_W_EMB_LO:_W_EMB_LO + D_IN, 0:E].set(we.astype(jnp.bfloat16))
    w_all = w_all.at[_W_FC1_LO:_W_FC1_LO + E, 0:H].set(w1[:E].astype(jnp.bfloat16))
    w_all = w_all.at[_W_FC1_LO:_W_FC1_LO + E, LANE:LANE + H].set(
        w1[E:].astype(jnp.bfloat16))
    w_all = w_all.at[_W_FC2_LO:_W_FC2_LO + H, 0:O].set(w2.astype(jnp.bfloat16))

    # pack the five small vectors into a single pre-padded (8, 128) f32 block
    vec = jnp.zeros((8, LANE), jnp.float32)
    vec = vec.at[0, :E].set(be)
    vec = vec.at[1, :H].set(b1)
    vec = vec.at[2, :H].set(gamma)
    vec = vec.at[3, :H].set(beta)
    vec = vec.at[4, :O].set(b2)
    return w_all, vec


@jax.jit
def siamese_forward(x1, x2, w_all, vec):
    bsz = x1.shape[0]
    vmem = pl.BlockSpec(memory_space=pltpu.MemorySpace.VMEM)
    out_padded = pl.pallas_call(
        siamese_kernel,
        out_shape=jax.ShapeDtypeStruct((bsz, LANE), jnp.float32),
        in_specs=[vmem] * 4,
        out_specs=vmem,
    )(x1, x2, w_all, vec)
    return out_padded[:, :O]


def make_params(key):
    ks = jax.random.split(key, 6)
    # synthetic embedding_net: Linear(D_IN, E), shared by both branches
    we = jax.random.normal(ks[0], (D_IN, E), jnp.float32) * 0.1
    be = jax.random.normal(ks[1], (E,), jnp.float32) * 0.1
    # fc1: Linear(100, 25) stored as [100, 25]
    w1 = jax.random.normal(ks[2], (2 * E, H), jnp.float32) * 0.1
    b1 = jax.random.normal(ks[3], (H,), jnp.float32) * 0.1
    # bn1: default PyTorch init (weight=1, bias=0)
    gamma = jnp.ones((H,), jnp.float32)
    beta = jnp.zeros((H,), jnp.float32)
    # fc2: Linear(25, 2)
    w2 = jax.random.normal(ks[4], (H, O), jnp.float32) * 0.1
    b2 = jax.random.normal(ks[5], (O,), jnp.float32) * 0.1
    return (we, be, w1, b1, gamma, beta, w2, b2)


def reference_forward(x1, x2, params):
    # Mirrors the PyTorch module (training-mode BN) with the same bf16
    # operand casts the kernel uses, so the comparison is apples-to-apples.
    we, be, w1, b1, gamma, beta, w2, b2 = params
    bf = lambda a: a.astype(jnp.bfloat16)
    e1 = jnp.dot(bf(x1), bf(we), preferred_element_type=jnp.float32) + be
    e2 = jnp.dot(bf(x2), bf(we), preferred_element_type=jnp.float32) + be
    concat = jnp.concatenate([e1, e2], axis=1).astype(jnp.bfloat16)
    h = jnp.maximum(
        jnp.dot(concat, bf(w1), preferred_element_type=jnp.float32) + b1, 0.0)
    mean = jnp.mean(h, axis=0, keepdims=True)
    var = jnp.mean((h - mean) ** 2, axis=0, keepdims=True)
    hn = (h - mean) * jax.lax.rsqrt(var + BN_EPS) * gamma + beta
    return jnp.dot(hn.astype(jnp.bfloat16), bf(w2),
                   preferred_element_type=jnp.float32) + b2


if __name__ == "__main__":
    key = jax.random.PRNGKey(0)
    k1, k2, kp = jax.random.split(key, 3)
    x1 = jax.random.normal(k1, (B, D_IN), jnp.float32)
    x2 = jax.random.normal(k2, (B, D_IN), jnp.float32)
    params = make_params(kp)

    # one-time parameter prep (padding / packing / casts hoisted off hot path)
    w_all, vec = prepare_params(params)
    w_all, vec = jax.block_until_ready((w_all, vec))

    out = siamese_forward(x1, x2, w_all, vec)
    out = jax.block_until_ready(out)

    ref = reference_forward(x1, x2, params)
    assert out.shape == (B, O), out.shape
    assert jnp.allclose(out, ref, atol=2e-3, rtol=2e-3), "mismatch vs JAX reference"

    # TODO(synk): BatchNorm1d running-mean/var buffer updates (stateful eval-mode
    # path) are not modeled; kernel implements training-mode batch statistics only.
    print("KERNEL_OK")
</pallas_src>

<mosaic_0001>
module attributes {stable_mosaic.version = 11 : i64} {
  func.func @siamese_kernel(%arg0: memref<8x32xf32, #tpu.memory_space<vmem>>, %arg1: memref<8x32xf32, #tpu.memory_space<vmem>>, %arg2: memref<288x256xbf16, #tpu.memory_space<vmem>>, %arg3: memref<8x128xf32, #tpu.memory_space<vmem>>, %arg4: memref<8x128xf32, #tpu.memory_space<vmem>>) attributes {dimension_semantics = [], scalar_prefetch = 0 : i64, scratch_operands = 0 : i64, tpu.core_type = #tpu.core_type<tc>} {
    %c0 = arith.constant 0 : index
    %c0_0 = arith.constant 0 : index
    %0 = vector.load %arg3[%c0, %c0_0] : memref<8x128xf32, #tpu.memory_space<vmem>>, vector<8x128xf32>
    %1 = vector.extract_strided_slice %0 {offsets = [0, 0], sizes = [1, 128], strides = [1, 1]} : vector<8x128xf32> to vector<1x128xf32>
    %2 = vector.extract_strided_slice %0 {offsets = [1, 0], sizes = [1, 128], strides = [1, 1]} : vector<8x128xf32> to vector<1x128xf32>
    %3 = vector.extract_strided_slice %0 {offsets = [2, 0], sizes = [1, 128], strides = [1, 1]} : vector<8x128xf32> to vector<1x128xf32>
    %4 = vector.extract_strided_slice %0 {offsets = [3, 0], sizes = [1, 128], strides = [1, 1]} : vector<8x128xf32> to vector<1x128xf32>
    %5 = vector.extract_strided_slice %0 {offsets = [4, 0], sizes = [1, 128], strides = [1, 1]} : vector<8x128xf32> to vector<1x128xf32>
    %c0_1 = arith.constant 0 : index
    %c0_2 = arith.constant 0 : index
    %6 = vector.load %arg2[%c0_1, %c0_2] : memref<288x256xbf16, #tpu.memory_space<vmem>>, vector<32x128xbf16>
    %c32 = arith.constant 32 : index
    %c0_3 = arith.constant 0 : index
    %7 = vector.load %arg2[%c32, %c0_3] : memref<288x256xbf16, #tpu.memory_space<vmem>>, vector<128x256xbf16>
    %c160 = arith.constant 160 : index
    %c0_4 = arith.constant 0 : index
    %8 = vector.load %arg2[%c160, %c0_4] : memref<288x256xbf16, #tpu.memory_space<vmem>>, vector<128x128xbf16>
    %c0_5 = arith.constant 0 : index
    %c0_6 = arith.constant 0 : index
    %9 = vector.load %arg0[%c0_5, %c0_6] : memref<8x32xf32, #tpu.memory_space<vmem>>, vector<8x32xf32>
    %c0_7 = arith.constant 0 : index
    %c0_8 = arith.constant 0 : index
    %10 = vector.load %arg1[%c0_7, %c0_8] : memref<8x32xf32, #tpu.memory_space<vmem>>, vector<8x32xf32>
    %11 = tpu.concatenate %9, %10 in 0 : vector<8x32xf32>, vector<8x32xf32> -> vector<16x32xf32>
    %12 = arith.truncf %11 : vector<16x32xf32> to vector<16x32xbf16>
    %cst = arith.constant dense<0.000000e+00> : vector<16x128xf32>
    %13 = tpu.matmul %12, %6, %cst {dimension_numbers = #tpu.dot_dimension_numbers<[1], [0], [0], [1], [0, 0, 1, 1], [], []>} : vector<16x32xbf16>, vector<32x128xbf16>, vector<16x128xf32> -> vector<16x128xf32>
    %14 = vector.broadcast %1 : vector<1x128xf32> to vector<16x128xf32>
    %15 = arith.addf %13, %14 : vector<16x128xf32>
    %16 = arith.truncf %15 : vector<16x128xf32> to vector<16x128xbf16>
    %cst_9 = arith.constant dense<0.000000e+00> : vector<16x256xf32>
    %17 = tpu.matmul %16, %7, %cst_9 {dimension_numbers = #tpu.dot_dimension_numbers<[1], [0], [0], [1], [0, 0, 1, 1], [], []>} : vector<16x128xbf16>, vector<128x256xbf16>, vector<16x256xf32> -> vector<16x256xf32>
    %18 = vector.extract_strided_slice %17 {offsets = [0, 0], sizes = [8, 128], strides = [1, 1]} : vector<16x256xf32> to vector<8x128xf32>
    %19 = vector.extract_strided_slice %17 {offsets = [8, 128], sizes = [8, 128], strides = [1, 1]} : vector<16x256xf32> to vector<8x128xf32>
    %20 = arith.addf %18, %19 : vector<8x128xf32>
    %21 = vector.broadcast %2 : vector<1x128xf32> to vector<8x128xf32>
    %22 = arith.addf %20, %21 : vector<8x128xf32>
    %cst_10 = arith.constant 0.000000e+00 : f32
    %23 = vector.broadcast %cst_10 : f32 to vector<8x128xf32>
    %24 = arith.maximumf %22, %23 : vector<8x128xf32>
    %cst_11 = arith.constant dense<0.000000e+00> : vector<128xf32>
    %25 = vector.multi_reduction <add>, %24, %cst_11 [0] : vector<8x128xf32> to vector<128xf32>
    %26 = vector.shape_cast %25 : vector<128xf32> to vector<1x128xf32>
    %27 = arith.mulf %24, %24 : vector<8x128xf32>
    %cst_12 = arith.constant dense<0.000000e+00> : vector<128xf32>
    %28 = vector.multi_reduction <add>, %27, %cst_12 [0] : vector<8x128xf32> to vector<128xf32>
    %29 = vector.shape_cast %28 : vector<128xf32> to vector<1x128xf32>
    %cst_13 = arith.constant 1.250000e-01 : f32
    %30 = vector.broadcast %cst_13 : f32 to vector<1x128xf32>
    %31 = arith.mulf %26, %30 : vector<1x128xf32>
    %cst_14 = arith.constant 1.250000e-01 : f32
    %32 = vector.broadcast %cst_14 : f32 to vector<1x128xf32>
    %33 = arith.mulf %29, %32 : vector<1x128xf32>
    %34 = arith.mulf %31, %31 : vector<1x128xf32>
    %35 = arith.subf %33, %34 : vector<1x128xf32>
    %cst_15 = arith.constant 0.000000e+00 : f32
    %36 = vector.broadcast %cst_15 : f32 to vector<1x128xf32>
    %37 = arith.maximumf %35, %36 : vector<1x128xf32>
    %cst_16 = arith.constant 9.99999974E-6 : f32
    %38 = vector.broadcast %cst_16 : f32 to vector<1x128xf32>
    %39 = arith.addf %37, %38 : vector<1x128xf32>
    %40 = math.rsqrt %39 : vector<1x128xf32>
    %41 = arith.mulf %3, %40 : vector<1x128xf32>
    %42 = arith.mulf %31, %41 : vector<1x128xf32>
    %43 = arith.subf %4, %42 : vector<1x128xf32>
    %44 = vector.broadcast %41 : vector<1x128xf32> to vector<8x128xf32>
    %45 = arith.mulf %24, %44 : vector<8x128xf32>
    %46 = vector.broadcast %43 : vector<1x128xf32> to vector<8x128xf32>
    %47 = arith.addf %45, %46 : vector<8x128xf32>
    %48 = arith.truncf %47 : vector<8x128xf32> to vector<8x128xbf16>
    %cst_17 = arith.constant dense<0.000000e+00> : vector<8x128xf32>
    %49 = tpu.matmul %48, %8, %cst_17 {dimension_numbers = #tpu.dot_dimension_numbers<[1], [0], [0], [1], [0, 0, 1, 1], [], []>} : vector<8x128xbf16>, vector<128x128xbf16>, vector<8x128xf32> -> vector<8x128xf32>
    %50 = vector.broadcast %5 : vector<1x128xf32> to vector<8x128xf32>
    %51 = arith.addf %49, %50 : vector<8x128xf32>
    %c0_18 = arith.constant 0 : index
    %c0_19 = arith.constant 0 : index
    %52 = vector.load %arg4[%c0_18, %c0_19] : memref<8x128xf32, #tpu.memory_space<vmem>>, vector<8x128xf32>
    tpu.vector_store %arg4[%c0_18, %c0_19], %51 {strides = array<i32>} : memref<8x128xf32, #tpu.memory_space<vmem>>, vector<8x128xf32>,
    return
  }
}

</mosaic_0001>

<bundles_post_ra>
// kernel: siamese_forward.1
= control target key start
LH: loop header
LB: loop body
LE: loop exit
PB: predicated region body
PF: predicated region fallthrough
CT: control target
= control target key end

     0   :  { %9 = vsyncpa [#allocation3], 0  ;;  %s705_s0 = inlined_call_operand.hbm [shape: f32[8,32], index: 0, kind: input, shape index: {}]   ;;  %s706_s1 = inlined_call_operand.hbm [shape: f32[8,32], index: 1, kind: input, shape index: {}]   ;;  %s707_s2 = inlined_call_operand.hbm [shape: bf16[288,256], index: 2, kind: input, shape index: {}]   ;;  %s708_s3 = inlined_call_operand.vmem [shape: f32[8,128], index: 3, kind: input, shape index: {}]   ;;  %s709_s4 = inlined_call_operand.vmem [shape: f32[8,128], index: 4, kind: output, shape index: {}]  }
   0x1   :  { %10 = vsyncpa [#allocation5], 0  ;;  %s602_s15 = smov [#allocation4]   ;;  %s603_s17 = smov [#allocation2]  }
   0x2   :  { %s27_s16 = sshll.u32 %s602_s15, 4  ;;  %s17_s18 = sshll.u32 %s603_s17, 4  ;;  %s28_s16 = int_to_ptr.vmem [resolvable:$true] %s27_s16  ;;  %s18_s18 = int_to_ptr.vmem [resolvable:$true] %s17_s18 }
   0x3   :  { %s532_s21 = scalar_lea.hbm %s706_s1, 128 }
   0x4   :  { %p533_p0 = scmp.ne.s32.totalorder %s706_s1, %s532_s21  ;;  %p536_p1 = scmp.lt.u32.totalorder %s532_s21, %s706_s1 }
   0x6   :  { %p538_p2 = pnand %p536_p1, %p533_p0 }
   0x8   :  { %541 = shalt.err (!%p538_p2)
}
   0x9   :  { %s542_s26 = scalar_lea.vmem %s28_s16, 128  ;;  %p547_p4 = scmp.lt.s32.totalorder %s28_s16, %s28_s16 }
   0xa   :  { %p543_p3 = scmp.ne.s32.totalorder %s28_s16, %s542_s26  ;;  %p548_p5 = scmp.lt.s32.totalorder %s542_s26, %s542_s26 }
   0xc   :  { %p549_p6 = por %p548_p5, %p547_p4 }
   0xe   :  { %p550_p7 = pnand %p549_p6, %p543_p3 }
  0x10   :  { %553 = shalt.err (!%p550_p7)
}
  0x11   :  { %30 = dma.hbm_to_vmem [thread:$0]  %s706_s1, 128, %s28_s16, [#allocation5]  }
  0x12   :  { %s554_s5 = scalar_lea.hbm %s705_s0, 128 }
  0x13   :  { %p555_p8 = scmp.ne.s32.totalorder %s705_s0, %s554_s5  ;;  %p558_p9 = scmp.lt.u32.totalorder %s554_s5, %s705_s0 }
  0x15   :  { %p560_p10 = pnand %p558_p9, %p555_p8 }
  0x17   :  { %563 = shalt.err (!%p560_p10)
}
  0x18   :  { %s564_s10 = scalar_lea.vmem %s18_s18, 128  ;;  %p569_p12 = scmp.lt.s32.totalorder %s18_s18, %s18_s18 }
  0x19   :  { %p565_p11 = scmp.ne.s32.totalorder %s18_s18, %s564_s10  ;;  %p570_p13 = scmp.lt.s32.totalorder %s564_s10, %s564_s10 }
  0x1b   :  { %p571_p0 = por %p570_p13, %p569_p12 }
  0x1d   :  { %p572_p1 = pnand %p571_p0, %p565_p11 }
  0x1f   :  { %575 = shalt.err (!%p572_p1)
}
  0x20   :  { %20 = dma.hbm_to_vmem [thread:$0]  %s705_s0, 128, %s18_s18, [#allocation3]  }
  0x21   :  { %s604_s12 = smov [#allocation6]   ;;  %s576_s16 = scalar_lea.hbm %s707_s2, 4608 }
  0x22   :  { %s36_s13 = sshll.u32 %s604_s12, 4  ;;  %p577_p2 = scmp.ne.s32.totalorder %s707_s2, %s576_s16  ;;  %s37_s13 = int_to_ptr.vmem [resolvable:$true] %s36_s13 }
  0x23   :  { %p580_p3 = scmp.lt.u32.totalorder %s576_s16, %s707_s2 }
  0x25   :  { %p582_p4 = pnand %p580_p3, %p577_p2 }
  0x27   :  { %585 = shalt.err (!%p582_p4)
}
  0x28   :  { %s586_s22 = scalar_lea.vmem %s37_s13, 4608  ;;  %p591_p6 = scmp.lt.s32.totalorder %s37_s13, %s37_s13 }
  0x29   :  { %p587_p5 = scmp.ne.s32.totalorder %s37_s13, %s586_s22  ;;  %p592_p7 = scmp.lt.s32.totalorder %s586_s22, %s586_s22 }
  0x2b   :  { %p593_p8 = por %p592_p7, %p591_p6 }
  0x2d   :  { %p594_p9 = pnand %p593_p8, %p587_p5 }
  0x2f   :  { %597 = shalt.err (!%p594_p9)
}
  0x30   :  { %s605_s0 = smov 128   ;;  %s606_s18 = smov 8  }
  0x31   :  { %42 = dma.hbm_to_vmem [thread:$0]  %s707_s2, 4608, %s37_s13, [#allocation5], %s605_s0, %s605_s0, %s606_s18  }
  0x32   :  { %598 = dma.done.wait [#allocation3], 128  }
  0x33   :  { %599 = vsyncadd [#allocation3], 4294967168 }
  0x34   :  { %600 = dma.done.wait [#allocation5], 4736  }
  0x35   :  { %601 = vsyncadd [#allocation5], 4294962560  ;;  %v607_v0 = vmov 0.0   ;;  %vm608_vm0 = vmmov 0   ;;  %v496_v1 = vld [vmem:[#allocation6] ss:$8 sps:$4 sm:$0xff]   ;;  %v95_v23 = vlaneseq }
  0x36   :  { %460 = vmatprep.subr.bf16.mxu0 %v607_v0  ;;  %464 = vmatprep.mubr.msk.bf16.mxu0 %vm608_vm0, %v607_v0  ;;  %v497_v2 = vld [vmem:[#allocation6 + $0x10] ss:$8 sps:$4 sm:$0xff]   ;;  %v498_v5 = vld [vmem:[#allocation6 + $0x24] ss:$8 sps:$4 sm:$0xff]   ;;  %v500_v6 = vld [vmem:[#allocation6 + $0x20] ss:$8 sps:$4 sm:$0xff]  }
  0x37   :  { %461 = vmatpush3.bf16.msra.mxu0 %v496_v1  ;;  %v92_v3 = vld [vmem:[#allocation2] sm:$0xff]  ;;  %v93_v4 = vld [vmem:[#allocation4] sm:$0xff]  ;;  %237 = vmatprep.subr.bf16.mxu1 %v498_v5  ;;  %vm111_vm1 = vcmask 261120   ;;  %v504_v10 = vld [vmem:[#allocation6 + $0x44] ss:$8 sps:$4 sm:$0xff]   ;;  %v609_v22 = vmov 0  }
  0x38   :  { %462 = vmatprep.subr.bf16.mxu0 %v607_v0  ;;  %v501_v7 = vld [vmem:[#allocation6 + $0x34] ss:$8 sps:$4 sm:$0xff]   ;;  %v94_v8 = vpack.c.bf16 %v93_v4, %v92_v3  ;;  %238 = vmatpush1.bf16.msra.mxu1 %v500_v6  ;;  %v503_v9 = vld [vmem:[#allocation6 + $0x30] ss:$8 sps:$4 sm:$0xff]   ;;  %v506_v11 = vld [vmem:[#allocation6 + $0x40] ss:$8 sps:$4 sm:$0xff]  }
  0x39   :  { %239 = vmatprep.subr.bf16.mxu1 %v501_v7  ;;  %v507_v12 = vld [vmem:[#allocation6 + $0x54] ss:$8 sps:$4 sm:$0xff]   ;;  %v509_v13 = vld [vmem:[#allocation6 + $0x50] ss:$8 sps:$4 sm:$0xff]   ;;  %v510_v14 = vld [vmem:[#allocation6 + $0x64] ss:$8 sps:$4 sm:$0xff]   ;;  %269 = vmatprep.mubr.bf16.mxu1 %v609_v22 }
  0x3a   :  { %v512_v15 = vld [vmem:[#allocation6 + $0x60] ss:$8 sps:$4 sm:$0xff]   ;;  %v513_v16 = vld [vmem:[#allocation6 + $0x74] ss:$8 sps:$4 sm:$0xff]   ;;  %v515_v17 = vld [vmem:[#allocation6 + $0x70] ss:$8 sps:$4 sm:$0xff]  }
  0x3b   :  { %463 = vmatpush3.bf16.msra.mxu0 %v497_v2  ;;  %v516_v18 = vld [vmem:[#allocation6 + $0x84] ss:$8 sps:$4 sm:$0xff]   ;;  %v518_v19 = vld [vmem:[#allocation6 + $0x80] ss:$8 sps:$4 sm:$0xff]   ;;  %v519_v20 = vld [vmem:[#allocation6 + $0x94] ss:$8 sps:$4 sm:$0xff]  }
  0x3c   :  { %468 = vmatprep.subr.bf16.mxu0 %v607_v0  ;;  %240 = vmatpush1.bf16.msra.mxu1 %v503_v9  ;;  %v521_v21 = vld [vmem:[#allocation6 + $0x90] ss:$8 sps:$4 sm:$0xff]   ;;  %v678_v24 = vshrl.u32 %v95_v23, 7  ;;  %v522_v35 = vld [vmem:[#allocation6 + $0xa0] ss:$8 sps:$4 sm:$0xff]  }
  0x3d   :  { %241 = vmatprep.subr.bf16.mxu1 %v504_v10  ;;  %v684_v26 = vld [vmem:[%s708_s3] sm:$0xff]  ;;  %v524_v37 = vld [vmem:[#allocation6 + $0xc0] ss:$8 sps:$4 sm:$0xff]  }
  0x3e   :  { %465 = vmatmul.mubr.msk.bf16.vlgmr.msra.gmra.mrb[0].mxu0 %vm111_vm1, %v94_v8  ;;  %v97_v25 = vsub.s32 0, %v678_v24  ;;  %v523_v36 = vld [vmem:[#allocation6 + $0xb0] ss:$8 sps:$4 sm:$0xff]   ;;  %v526_v39 = vld [vmem:[#allocation6 + $0xe0] ss:$8 sps:$4 sm:$0xff]   ;;  %v281_v43 = vsub.s32 1, %v678_v24 }
  0x3f   :  { %484 = vmatprep.mubr.msk.bf16.mxu0 %vm608_vm0, %v607_v0  ;;  %469 = vmatpush3.bf16.msra.mxu0 %v522_v35  ;;  %v525_v38 = vld [vmem:[#allocation6 + $0xd0] ss:$8 sps:$4 sm:$0xff]   ;;  %v528_v41 = vld [vmem:[#allocation6 + $0x100] ss:$8 sps:$4 sm:$0xff]   ;;  %v313_v9 = vsub.s32 2, %v678_v24 }
  0x40   :  { %242 = vmatpush1.bf16.msra.mxu1 %v506_v11  ;;  %v98_v27 = vrot.slane %v684_v26, %v97_v25  ;;  %470 = vmatprep.subr.bf16.mxu0 %v607_v0  ;;  %v527_v40 = vld [vmem:[#allocation6 + $0xf0] ss:$8 sps:$4 sm:$0xff]   ;;  %v282_v47 = vrot.slane %v684_v26, %v281_v43 }
  0x41   :  { %243 = vmatprep.subr.bf16.mxu1 %v507_v12  ;;  %v529_v42 = vld [vmem:[#allocation6 + $0x110] ss:$8 sps:$4 sm:$0xff]  }
  0x43   :  { %471 = vmatpush3.bf16.msra.mxu0 %v523_v36 }
  0x44   :  { %244 = vmatpush1.bf16.msra.mxu1 %v509_v13  ;;  %472 = vmatprep.subr.bf16.mxu0 %v607_v0  ;;  %v318_v13 = vsub.s32 3, %v678_v24 }
  0x45   :  { %245 = vmatprep.subr.bf16.mxu1 %v510_v14 }
  0x47   :  { %473 = vmatpush3.bf16.msra.mxu0 %v524_v37 }
  0x48   :  { %246 = vmatpush1.bf16.msra.mxu1 %v512_v15  ;;  %474 = vmatprep.subr.bf16.mxu0 %v607_v0 }
  0x49   :  { %247 = vmatprep.subr.bf16.mxu1 %v513_v16 }
  0x4b   :  { %475 = vmatpush3.bf16.msra.mxu0 %v525_v38 }
  0x4c   :  { %248 = vmatpush1.bf16.msra.mxu1 %v515_v17  ;;  %476 = vmatprep.subr.bf16.mxu0 %v607_v0 }
  0x4d   :  { %249 = vmatprep.subr.bf16.mxu1 %v516_v18 }
  0x4f   :  { %477 = vmatpush3.bf16.msra.mxu0 %v526_v39 }
  0x50   :  { %250 = vmatpush1.bf16.msra.mxu1 %v518_v19  ;;  %478 = vmatprep.subr.bf16.mxu0 %v607_v0  ;;  %v324_v19 = vsub.s32 4, %v678_v24 }
  0x51   :  { %251 = vmatprep.subr.bf16.mxu1 %v519_v20 }
  0x52   :  { %v325_v20 = vrot.slane %v684_v26, %v324_v19 }
  0x53   :  { %479 = vmatpush3.bf16.msra.mxu0 %v527_v40 }
  0x54   :  { %252 = vmatpush1.bf16.msra.mxu1 %v521_v21  ;;  %480 = vmatprep.subr.bf16.mxu0 %v607_v0 }
  0x57   :  { %481 = vmatpush3.bf16.msra.mxu0 %v528_v41 }
  0x58   :  { %482 = vmatprep.subr.bf16.mxu0 %v607_v0 }
  0x5b   :  { %483 = vmatpush3.bf16.msra.mxu0 %v529_v42 }
 0x111   :  { %v149_v28 = vpop.f32.mrb[0].mxu0 }
 0x112   :  { %v466_v29 = vpop.f32.mrb[1].mxu0  ;;  %v150_v31 = vadd.f32 %v149_v28, %v98_v27 }
 0x113   :  { %v152_v30 = vpop.f32.mrb[2].mxu0 }
 0x114   :  { %v153_v32 = vadd.f32 %v152_v30, %v98_v27  ;;  %v467_v33 = vpop.f32.mrb[3].mxu0 }
 0x116   :  { %v156_v34 = vpack.c.bf16 %v153_v32, %v150_v31 }
 0x118   :  { %270 = vmatmul.mubr.bf16.vlgmr.msra.gmra.mrb[0].mxu1 %v156_v34 }
 0x1eb   :  { %v271_v44 = vpop.f32.mrb[0].mxu1 }
 0x1ec   :  { %v273_v45 = vpop.f32.mrb[1].mxu1 }
 0x1ed   :  { %v274_v46 = vpop.f32.mrb[2].mxu1 }
 0x1ee   :  { %v275_v48 = vpop.f32.mrb[3].mxu1 }
 0x1ef   :  { %v278_v49 = vadd.f32 %v275_v48, %v271_v44 }
 0x1f1   :  { %v283_v50 = vadd.f32 %v282_v47, %v278_v49 }
 0x1f3   :  { %v284_v51 = vmax.f32 %v283_v50, 0.0 }
 0x1f5   :  { %v285_v52 = vrot.slane %v284_v51, 4  ;;  %v291_v53 = vmul.f32 %v284_v51, %v284_v51 }
 0x1f7   :  { %v286_v54 = vadd.f32 %v285_v52, %v284_v51  ;;  %v292_v55 = vrot.slane %v291_v53, 4 }
 0x1f9   :  { %v287_v56 = vrot.slane %v286_v54, 2  ;;  %v293_v57 = vadd.f32 %v292_v55, %v291_v53 }
 0x1fb   :  { %v288_v58 = vadd.f32 %v287_v56, %v286_v54  ;;  %v294_v59 = vrot.slane %v293_v57, 2 }
 0x1fd   :  { %v289_v60 = vrot.slane %v288_v58, 1  ;;  %v295_v61 = vadd.f32 %v294_v59, %v293_v57 }
 0x1ff   :  { %v290_v62 = vadd.f32 %v289_v60, %v288_v58  ;;  %v296_v63 = vrot.slane %v295_v61, 1 }
 0x201   :  { %v297_v0 = vadd.f32 %v296_v63, %v295_v61  ;;  %v298_v1 = vmul.f32 0.125, %v290_v62 }
 0x203   :  { %v299_v2 = vmul.f32 0.125, %v297_v0  ;;  %v300_v3 = vmul.f32 %v298_v1, %v298_v1 }
 0x205   :  { %v301_v4 = vsub.f32 %v299_v2, %v300_v3 }
 0x207   :  { %v302_v5 = vmax.f32 %v301_v4, 0.0 }
 0x209   :  { %v303_v6 = vadd.f32 1e-05, %v302_v5 }
 0x20b   :  { %530 = vrsqrt.f32 %v303_v6 }
 0x215   :  { %v531_v7 = vpop.eup %530 }
 0x216   :  { %v305_v8 = vmul.f32 %v531_v7, %v684_v26 }
 0x218   :  { %v306_v10 = vmul.f32 %v305_v8, %v298_v1  ;;  %v314_v12 = vrot.slane %v305_v8, %v313_v9 }
 0x21a   :  { %v308_v11 = vrot.slane %v306_v10, 7  ;;  %v315_v15 = vmul.f32 %v314_v12, %v284_v51 }
 0x21c   :  { %v310_v14 = vsub.f32 %v684_v26, %v308_v11 }
 0x21e   :  { %v319_v16 = vrot.slane %v310_v14, %v318_v13 }
 0x220   :  { %v320_v17 = vadd.f32 %v319_v16, %v315_v15 }
 0x222   :  { %v321_v18 = vpack.c.bf16 %v320_v17, %v320_v17 }
 0x224   :  { %485 = vmatmul.mubr.bf16.vlgmr.msra.gmra.mrb[4].mxu0 %v321_v18 }
 0x2f7   :  { %v408_v21 = vpop.f32.mrb[4].mxu0 }
 0x2f8   :  { %v409_v22 = vadd.f32 %v408_v21, %v325_v20  ;;  %v486_v23 = vpop.f32.mrb[5].mxu0 }
 0x2f9   :  { %v411_v25 = vpop.f32.mrb[6].mxu0 }
 0x2fa   :  { %414 = vst [vmem:[%s709_s4] sm:$0xff] %v409_v22  ;;  %v487_v27 = vpop.f32.mrb[7].mxu0 }
 0x2fb   :  { %419 = vsyncpa [#allocation3], 1 }
 0x2fc   :  { %420 = vsyncpa [#allocation5], 1 }

</bundles_post_ra>
